<compile_context>
chip_gen: v7x
topology: tpu7x:2x2x1
jax: 0.10.0
libtpu: 0.0.40
codegen_flags: <defaults>
</compile_context>

<pallas_src>
import math

import jax
import jax.numpy as jnp
import numpy as np
from jax.experimental import pallas as pl
from jax.experimental.pallas import tpu as pltpu

_BN_EPS = 1e-5
_INV_SQRT2 = 1.0 / math.sqrt(2.0)
_LANE = 128
_SUBLANE = 8


def _round_up(n, m):
    return ((n + m - 1) // m) * m


def _pad2d(a, rows, cols):
    r, c = a.shape
    if r == rows and c == cols:
        return a
    return jnp.pad(a, ((0, rows - r), (0, cols - c)))


def _classifier_kernel(
    x_ref,
    w1_ref, b1_ref,
    w2_ref, b2_ref,
    wa1_ref, ba1_ref,
    wa2_ref, ba2_ref,
    w3_ref, b3_ref,
    o_ref,
):
    """One batch tile: Linear(+folded BN) -> GELU -> Linear -> AttnGate -> Linear."""
    mxu = w1_ref.dtype
    x = x_ref[...]                                             # (TM, IN_P), bf16

    # --- Linear(in -> 2H), eval-mode BatchNorm pre-folded into w1/b1 ---
    h = jnp.dot(x, w1_ref[...], preferred_element_type=jnp.float32) + b1_ref[...]

    # --- exact GELU (erf-based, matches torch default), f32 ---
    h = 0.5 * h * (1.0 + jax.lax.erf(h * _INV_SQRT2))
    # (Dropout -> identity at inference)

    # --- Linear(2H -> H) ---
    h = jnp.dot(h.astype(mxu), w2_ref[...],
                preferred_element_type=jnp.float32) + b2_ref[...]

    # --- MedicalAttentionGate(H) ---
    a = jax.nn.sigmoid(
        jnp.dot(h.astype(mxu), wa1_ref[...],
                preferred_element_type=jnp.float32) + ba1_ref[...])
    a = jax.nn.sigmoid(
        jnp.dot(a.astype(mxu), wa2_ref[...],
                preferred_element_type=jnp.float32) + ba2_ref[...])
    h = h * a
    # (Dropout -> identity at inference)

    # --- Linear(H -> out) ---
    out = jnp.dot(h.astype(mxu), w3_ref[...],
                  preferred_element_type=jnp.float32) + b3_ref[...]
    o_ref[...] = out.astype(o_ref.dtype)


def enhanced_classifier_forward(x, params, *, tile_m=256, mxu_dtype=jnp.bfloat16):
    """x: (B, in_features) f32.  params: dict of f32 arrays (see init_params)."""
    B, in_f = x.shape
    he = params["w1"].shape[1]       # hidden * 2
    hd = params["w2"].shape[1]       # hidden
    bo = params["wa1"].shape[1]      # bottleneck
    out_f = params["w3"].shape[1]

    # ---- Fold eval-mode BatchNorm into the first linear (host side, f32) ----
    scale = params["bn_gamma"] * jax.lax.rsqrt(params["bn_var"] + _BN_EPS)    # (1, 2H)
    w1 = params["w1"] * scale
    b1 = (params["b1"] - params["bn_mean"]) * scale + params["bn_beta"]

    # ---- Lane-dense padding: every feature dim up to a multiple of 128.     ----
    # Zero-padded weight columns/rows + zero-padded biases keep padded lanes
    # exactly zero through the whole network (sigmoid(0)=0.5 in the gate is
    # multiplied by a zero activation), so results are unchanged.
    in_p = _round_up(in_f, _LANE)
    he_p = _round_up(he, _LANE)
    hd_p = _round_up(hd, _LANE)
    bo_p = _round_up(bo, _LANE)
    out_p = _round_up(out_f, _LANE)

    # ---- Batch tiling (sublane-aligned), ragged tail zero-padded ----
    tm = min(tile_m, _round_up(B, _SUBLANE))
    tm = _round_up(tm, _SUBLANE)
    b_p = _round_up(B, tm)

    x_p = _pad2d(x, b_p, in_p).astype(mxu_dtype)

    def wpad(a, r, c):
        return _pad2d(a, r, c).astype(mxu_dtype)

    def bpad(a, c):
        return _pad2d(a, 1, c).astype(jnp.float32)

    args = (
        x_p,
        wpad(w1, in_p, he_p), bpad(b1, he_p),
        wpad(params["w2"], he_p, hd_p), bpad(params["b2"], hd_p),
        wpad(params["wa1"], hd_p, bo_p), bpad(params["ba1"], bo_p),
        wpad(params["wa2"], bo_p, hd_p), bpad(params["ba2"], hd_p),
        wpad(params["w3"], hd_p, out_p), bpad(params["b3"], out_p),
    )

    # x/out stream per batch tile; weights/biases have constant index maps so
    # they are DMA'd once and stay resident across the whole grid.
    x_spec = pl.BlockSpec((tm, in_p), lambda i: (i, 0))
    out_spec = pl.BlockSpec((tm, out_p), lambda i: (i, 0))
    res_specs = [pl.BlockSpec(a.shape, lambda i: (0, 0)) for a in args[1:]]

    # ---- Derived VMEM budget (portable to v7x: 64 MiB physical) ----
    f32b = 4
    mxb = jnp.dtype(mxu_dtype).itemsize
    weight_bytes = sum(int(np.prod(a.shape)) * a.dtype.itemsize for a in args[1:])
    io_bytes = 2 * tm * in_p * mxb + 2 * tm * out_p * f32b       # double-buffered tiles
    act_bytes = tm * (he_p + 2 * hd_p + bo_p + out_p) * (f32b + mxb)
    vmem_limit = int(1.5 * (weight_bytes + io_bytes + act_bytes)) + (4 << 20)
    vmem_limit = min(max(vmem_limit, 32 << 20), 60 << 20)

    out = pl.pallas_call(
        _classifier_kernel,
        out_shape=jax.ShapeDtypeStruct((b_p, out_p), jnp.float32),
        grid=(b_p // tm,),
        in_specs=[x_spec] + res_specs,
        out_specs=out_spec,
        compiler_params=pltpu.CompilerParams(
            dimension_semantics=("parallel",),      # batch tiles split across TCs
            vmem_limit_bytes=vmem_limit,
        ),
    )(*args)

    return out[:B, :out_f]


def _empirical_gelu_gain(key):
    # Mirrors EnhancedClassifier._get_empirical_gelu_gain(): std(x) / std(gelu(x))
    toy = jax.random.normal(key, (100000,), dtype=jnp.float32)
    act = jax.nn.gelu(toy, approximate=False)
    s_in = jnp.std(toy, ddof=1)
    s_out = jnp.std(act, ddof=1)
    return float(jnp.where(s_out == 0, 1.0, s_in / s_out))


def init_params(key, in_features, out_features, hidden_dim):
    hidden_expanded = hidden_dim * 2
    bottleneck = max(1, hidden_dim // 4)

    k_gain, k1, k2, k3, ka1, ka2 = jax.random.split(key, 6)
    gain = _empirical_gelu_gain(k_gain)

    def linear(k, fan_in, fan_out):
        std = 0.02 if fan_in == 0 else gain / math.sqrt(fan_in)
        # stored as (fan_in, fan_out) == torch weight (out,in) transposed
        w = std * jax.random.normal(k, (fan_in, fan_out), dtype=jnp.float32)
        b = jnp.full((1, fan_out), 0.1, dtype=jnp.float32)
        return w, b

    w1, b1 = linear(k1, in_features, hidden_expanded)
    w2, b2 = linear(k2, hidden_expanded, hidden_dim)
    wa1, ba1 = linear(ka1, hidden_dim, bottleneck)
    wa2, ba2 = linear(ka2, bottleneck, hidden_dim)
    w3, b3 = linear(k3, hidden_dim, out_features)

    return {
        "w1": w1, "b1": b1,
        "bn_gamma": jnp.ones((1, hidden_expanded), jnp.float32),
        "bn_beta": jnp.zeros((1, hidden_expanded), jnp.float32),
        "bn_mean": jnp.zeros((1, hidden_expanded), jnp.float32),
        "bn_var": jnp.ones((1, hidden_expanded), jnp.float32),
        "w2": w2, "b2": b2,
        "wa1": wa1, "ba1": ba1,
        "wa2": wa2, "ba2": ba2,
        "w3": w3, "b3": b3,
    }


def _reference_forward(x, p):
    h = x @ p["w1"] + p["b1"]
    h = (h - p["bn_mean"]) / jnp.sqrt(p["bn_var"] + _BN_EPS) * p["bn_gamma"] + p["bn_beta"]
    h = jax.nn.gelu(h, approximate=False)
    h = h @ p["w2"] + p["b2"]
    a = jax.nn.sigmoid(h @ p["wa1"] + p["ba1"])
    a = jax.nn.sigmoid(a @ p["wa2"] + p["ba2"])
    h = h * a
    return h @ p["w3"] + p["b3"]


if __name__ == "__main__":
    key = jax.random.PRNGKey(0)
    k_x, k_p = jax.random.split(key)

    batch, in_features, hidden_dim, out_features = 8, 128, 32, 2
    x = jax.random.normal(k_x, (batch, in_features), dtype=jnp.float32)
    params = init_params(k_p, in_features, out_features, hidden_dim)

    out = enhanced_classifier_forward(x, params)
    out = jax.block_until_ready(out)

    ref = _reference_forward(x, params)
    np.testing.assert_allclose(np.asarray(out), np.asarray(ref), rtol=3e-2, atol=3e-2)

    print("KERNEL_OK")
</pallas_src>

<mosaic_0001>
module attributes {stable_mosaic.version = 11 : i64} {
  func.func @_classifier_kernel(%arg0: i32, %arg1: memref<8x128xbf16, #tpu.memory_space<vmem>>, %arg2: memref<128x128xbf16, #tpu.memory_space<vmem>>, %arg3: memref<1x128xf32, #tpu.memory_space<vmem>>, %arg4: memref<128x128xbf16, #tpu.memory_space<vmem>>, %arg5: memref<1x128xf32, #tpu.memory_space<vmem>>, %arg6: memref<128x128xbf16, #tpu.memory_space<vmem>>, %arg7: memref<1x128xf32, #tpu.memory_space<vmem>>, %arg8: memref<128x128xbf16, #tpu.memory_space<vmem>>, %arg9: memref<1x128xf32, #tpu.memory_space<vmem>>, %arg10: memref<128x128xbf16, #tpu.memory_space<vmem>>, %arg11: memref<1x128xf32, #tpu.memory_space<vmem>>, %arg12: memref<8x128xf32, #tpu.memory_space<vmem>>) attributes {dimension_semantics = [#tpu.dimension_semantics<parallel>], iteration_bounds = array<i64: 1>, scalar_prefetch = 0 : i64, scratch_operands = 0 : i64, tpu.core_type = #tpu.core_type<tc>, window_params = [{transform_indices = @transform_0, window_bounds = array<i64: 8, 128>}, {pipeline_mode = #tpu.pipeline_mode<synchronous>, transform_indices = @transform_1, window_bounds = array<i64: 128, 128>}, {pipeline_mode = #tpu.pipeline_mode<synchronous>, transform_indices = @transform_2, window_bounds = array<i64: 1, 128>}, {pipeline_mode = #tpu.pipeline_mode<synchronous>, transform_indices = @transform_3, window_bounds = array<i64: 128, 128>}, {pipeline_mode = #tpu.pipeline_mode<synchronous>, transform_indices = @transform_4, window_bounds = array<i64: 1, 128>}, {pipeline_mode = #tpu.pipeline_mode<synchronous>, transform_indices = @transform_5, window_bounds = array<i64: 128, 128>}, {pipeline_mode = #tpu.pipeline_mode<synchronous>, transform_indices = @transform_6, window_bounds = array<i64: 1, 128>}, {pipeline_mode = #tpu.pipeline_mode<synchronous>, transform_indices = @transform_7, window_bounds = array<i64: 128, 128>}, {pipeline_mode = #tpu.pipeline_mode<synchronous>, transform_indices = @transform_8, window_bounds = array<i64: 1, 128>}, {pipeline_mode = #tpu.pipeline_mode<synchronous>, transform_indices = @transform_9, window_bounds = array<i64: 128, 128>}, {pipeline_mode = #tpu.pipeline_mode<synchronous>, transform_indices = @transform_10, window_bounds = array<i64: 1, 128>}, {transform_indices = @transform_11, window_bounds = array<i64: 8, 128>}]} {
    %c0 = arith.constant 0 : index
    %c0_0 = arith.constant 0 : index
    %0 = vector.load %arg1[%c0, %c0_0] : memref<8x128xbf16, #tpu.memory_space<vmem>>, vector<8x128xbf16>
    %c0_1 = arith.constant 0 : index
    %c0_2 = arith.constant 0 : index
    %1 = vector.load %arg2[%c0_1, %c0_2] : memref<128x128xbf16, #tpu.memory_space<vmem>>, vector<128x128xbf16>
    %cst = arith.constant dense<0.000000e+00> : vector<8x128xf32>
    %2 = tpu.matmul %0, %1, %cst {dimension_numbers = #tpu.dot_dimension_numbers<[1], [0], [0], [1], [0, 0, 1, 1], [], []>} : vector<8x128xbf16>, vector<128x128xbf16>, vector<8x128xf32> -> vector<8x128xf32>
    %c0_3 = arith.constant 0 : index
    %c0_4 = arith.constant 0 : index
    %3 = vector.load %arg3[%c0_3, %c0_4] : memref<1x128xf32, #tpu.memory_space<vmem>>, vector<1x128xf32>
    %4 = vector.broadcast %3 : vector<1x128xf32> to vector<8x128xf32>
    %5 = arith.addf %2, %4 : vector<8x128xf32>
    %cst_5 = arith.constant 5.000000e-01 : f32
    %6 = vector.broadcast %cst_5 : f32 to vector<8x128xf32>
    %7 = arith.mulf %6, %5 : vector<8x128xf32>
    %cst_6 = arith.constant 0.707106769 : f32
    %8 = vector.broadcast %cst_6 : f32 to vector<8x128xf32>
    %9 = arith.mulf %5, %8 : vector<8x128xf32>
    %10 = math.erf %9 : vector<8x128xf32>
    %cst_7 = arith.constant 1.000000e+00 : f32
    %11 = vector.broadcast %cst_7 : f32 to vector<8x128xf32>
    %12 = arith.addf %11, %10 : vector<8x128xf32>
    %13 = arith.mulf %7, %12 : vector<8x128xf32>
    %14 = arith.truncf %13 : vector<8x128xf32> to vector<8x128xbf16>
    %c0_8 = arith.constant 0 : index
    %c0_9 = arith.constant 0 : index
    %15 = vector.load %arg4[%c0_8, %c0_9] : memref<128x128xbf16, #tpu.memory_space<vmem>>, vector<128x128xbf16>
    %cst_10 = arith.constant dense<0.000000e+00> : vector<8x128xf32>
    %16 = tpu.matmul %14, %15, %cst_10 {dimension_numbers = #tpu.dot_dimension_numbers<[1], [0], [0], [1], [0, 0, 1, 1], [], []>} : vector<8x128xbf16>, vector<128x128xbf16>, vector<8x128xf32> -> vector<8x128xf32>
    %c0_11 = arith.constant 0 : index
    %c0_12 = arith.constant 0 : index
    %17 = vector.load %arg5[%c0_11, %c0_12] : memref<1x128xf32, #tpu.memory_space<vmem>>, vector<1x128xf32>
    %18 = vector.broadcast %17 : vector<1x128xf32> to vector<8x128xf32>
    %19 = arith.addf %16, %18 : vector<8x128xf32>
    %20 = arith.truncf %19 : vector<8x128xf32> to vector<8x128xbf16>
    %c0_13 = arith.constant 0 : index
    %c0_14 = arith.constant 0 : index
    %21 = vector.load %arg6[%c0_13, %c0_14] : memref<128x128xbf16, #tpu.memory_space<vmem>>, vector<128x128xbf16>
    %cst_15 = arith.constant dense<0.000000e+00> : vector<8x128xf32>
    %22 = tpu.matmul %20, %21, %cst_15 {dimension_numbers = #tpu.dot_dimension_numbers<[1], [0], [0], [1], [0, 0, 1, 1], [], []>} : vector<8x128xbf16>, vector<128x128xbf16>, vector<8x128xf32> -> vector<8x128xf32>
    %c0_16 = arith.constant 0 : index
    %c0_17 = arith.constant 0 : index
    %23 = vector.load %arg7[%c0_16, %c0_17] : memref<1x128xf32, #tpu.memory_space<vmem>>, vector<1x128xf32>
    %24 = vector.broadcast %23 : vector<1x128xf32> to vector<8x128xf32>
    %25 = arith.addf %22, %24 : vector<8x128xf32>
    %26 = arith.negf %25 : vector<8x128xf32>
    %27 = math.exp %26 : vector<8x128xf32>
    %cst_18 = arith.constant 1.000000e+00 : f32
    %28 = vector.broadcast %cst_18 : f32 to vector<8x128xf32>
    %29 = arith.addf %28, %27 : vector<8x128xf32>
    %30 = arith.divf %28, %29 : vector<8x128xf32>
    %31 = arith.truncf %30 : vector<8x128xf32> to vector<8x128xbf16>
    %c0_19 = arith.constant 0 : index
    %c0_20 = arith.constant 0 : index
    %32 = vector.load %arg8[%c0_19, %c0_20] : memref<128x128xbf16, #tpu.memory_space<vmem>>, vector<128x128xbf16>
    %cst_21 = arith.constant dense<0.000000e+00> : vector<8x128xf32>
    %33 = tpu.matmul %31, %32, %cst_21 {dimension_numbers = #tpu.dot_dimension_numbers<[1], [0], [0], [1], [0, 0, 1, 1], [], []>} : vector<8x128xbf16>, vector<128x128xbf16>, vector<8x128xf32> -> vector<8x128xf32>
    %c0_22 = arith.constant 0 : index
    %c0_23 = arith.constant 0 : index
    %34 = vector.load %arg9[%c0_22, %c0_23] : memref<1x128xf32, #tpu.memory_space<vmem>>, vector<1x128xf32>
    %35 = vector.broadcast %34 : vector<1x128xf32> to vector<8x128xf32>
    %36 = arith.addf %33, %35 : vector<8x128xf32>
    %37 = arith.negf %36 : vector<8x128xf32>
    %38 = math.exp %37 : vector<8x128xf32>
    %cst_24 = arith.constant 1.000000e+00 : f32
    %39 = vector.broadcast %cst_24 : f32 to vector<8x128xf32>
    %40 = arith.addf %39, %38 : vector<8x128xf32>
    %41 = arith.divf %39, %40 : vector<8x128xf32>
    %42 = arith.mulf %19, %41 : vector<8x128xf32>
    %43 = arith.truncf %42 : vector<8x128xf32> to vector<8x128xbf16>
    %c0_25 = arith.constant 0 : index
    %c0_26 = arith.constant 0 : index
    %44 = vector.load %arg10[%c0_25, %c0_26] : memref<128x128xbf16, #tpu.memory_space<vmem>>, vector<128x128xbf16>
    %cst_27 = arith.constant dense<0.000000e+00> : vector<8x128xf32>
    %45 = tpu.matmul %43, %44, %cst_27 {dimension_numbers = #tpu.dot_dimension_numbers<[1], [0], [0], [1], [0, 0, 1, 1], [], []>} : vector<8x128xbf16>, vector<128x128xbf16>, vector<8x128xf32> -> vector<8x128xf32>
    %c0_28 = arith.constant 0 : index
    %c0_29 = arith.constant 0 : index
    %46 = vector.load %arg11[%c0_28, %c0_29] : memref<1x128xf32, #tpu.memory_space<vmem>>, vector<1x128xf32>
    %47 = vector.broadcast %46 : vector<1x128xf32> to vector<8x128xf32>
    %48 = arith.addf %45, %47 : vector<8x128xf32>
    %c0_30 = arith.constant 0 : index
    %c0_31 = arith.constant 0 : index
    %49 = vector.load %arg12[%c0_30, %c0_31] : memref<8x128xf32, #tpu.memory_space<vmem>>, vector<8x128xf32>
    tpu.vector_store %arg12[%c0_30, %c0_31], %48 {strides = array<i32>} : memref<8x128xf32, #tpu.memory_space<vmem>>, vector<8x128xf32>,
    return
  }
  func.func @transform_0(%arg0: i32) -> (i32, i32) {
    %c0_i32 = arith.constant 0 : i32
    %c0_i32_0 = arith.constant 0 : i32
    return %arg0, %c0_i32 : i32, i32
  }
  func.func @transform_1(%arg0: i32) -> (i32, i32) {
    %c0_i32 = arith.constant 0 : i32
    %c0_i32_0 = arith.constant 0 : i32
    %c0_i32_1 = arith.constant 0 : i32
    return %c0_i32, %c0_i32_0 : i32, i32
  }
  func.func @transform_2(%arg0: i32) -> (i32, i32) {
    %c0_i32 = arith.constant 0 : i32
    %c0_i32_0 = arith.constant 0 : i32
    %c0_i32_1 = arith.constant 0 : i32
    return %c0_i32, %c0_i32_0 : i32, i32
  }
  func.func @transform_3(%arg0: i32) -> (i32, i32) {
    %c0_i32 = arith.constant 0 : i32
    %c0_i32_0 = arith.constant 0 : i32
    %c0_i32_1 = arith.constant 0 : i32
    return %c0_i32, %c0_i32_0 : i32, i32
  }
  func.func @transform_4(%arg0: i32) -> (i32, i32) {
    %c0_i32 = arith.constant 0 : i32
    %c0_i32_0 = arith.constant 0 : i32
    %c0_i32_1 = arith.constant 0 : i32
    return %c0_i32, %c0_i32_0 : i32, i32
  }
  func.func @transform_5(%arg0: i32) -> (i32, i32) {
    %c0_i32 = arith.constant 0 : i32
    %c0_i32_0 = arith.constant 0 : i32
    %c0_i32_1 = arith.constant 0 : i32
    return %c0_i32, %c0_i32_0 : i32, i32
  }
  func.func @transform_6(%arg0: i32) -> (i32, i32) {
    %c0_i32 = arith.constant 0 : i32
    %c0_i32_0 = arith.constant 0 : i32
    %c0_i32_1 = arith.constant 0 : i32
    return %c0_i32, %c0_i32_0 : i32, i32
  }
  func.func @transform_7(%arg0: i32) -> (i32, i32) {
    %c0_i32 = arith.constant 0 : i32
    %c0_i32_0 = arith.constant 0 : i32
    %c0_i32_1 = arith.constant 0 : i32
    return %c0_i32, %c0_i32_0 : i32, i32
  }
  func.func @transform_8(%arg0: i32) -> (i32, i32) {
    %c0_i32 = arith.constant 0 : i32
    %c0_i32_0 = arith.constant 0 : i32
    %c0_i32_1 = arith.constant 0 : i32
    return %c0_i32, %c0_i32_0 : i32, i32
  }
  func.func @transform_9(%arg0: i32) -> (i32, i32) {
    %c0_i32 = arith.constant 0 : i32
    %c0_i32_0 = arith.constant 0 : i32
    %c0_i32_1 = arith.constant 0 : i32
    return %c0_i32, %c0_i32_0 : i32, i32
  }
  func.func @transform_10(%arg0: i32) -> (i32, i32) {
    %c0_i32 = arith.constant 0 : i32
    %c0_i32_0 = arith.constant 0 : i32
    %c0_i32_1 = arith.constant 0 : i32
    return %c0_i32, %c0_i32_0 : i32, i32
  }
  func.func @transform_11(%arg0: i32) -> (i32, i32) {
    %c0_i32 = arith.constant 0 : i32
    %c0_i32_0 = arith.constant 0 : i32
    return %arg0, %c0_i32 : i32, i32
  }
}

</mosaic_0001>

<bundles_post_ra>
// kernel: tpu_custom_call.1
= control target key start
LH: loop header
LB: loop body
LE: loop exit
PB: predicated region body
PF: predicated region fallthrough
CT: control target
= control target key end

     0   :  { %16 = vsyncpa [#allocation3], 0  ;;  %s1374_s0 = inlined_call_operand.hbm [shape: bf16[8,128], index: 0, kind: input, shape index: {}]   ;;  %s1375_s1 = inlined_call_operand.hbm [shape: bf16[128,128], index: 1, kind: input, shape index: {}]   ;;  %s1376_s2 = inlined_call_operand.vmem [shape: f32[1,128], index: 2, kind: input, shape index: {}]   ;;  %s1377_s3 = inlined_call_operand.hbm [shape: bf16[128,128], index: 3, kind: input, shape index: {}]   ;;  %s1378_s4 = inlined_call_operand.vmem [shape: f32[1,128], index: 4, kind: input, shape index: {}]   ;;  %s1379_s5 = inlined_call_operand.hbm [shape: bf16[128,128], index: 5, kind: input, shape index: {}]   ;;  %s1380_s6 = inlined_call_operand.vmem [shape: f32[1,128], index: 6, kind: input, shape index: {}]   ;;  %s1381_s7 = inlined_call_operand.hbm [shape: bf16[128,128], index: 7, kind: input, shape index: {}]   ;;  %s1382_s8 = inlined_call_operand.vmem [shape: f32[1,128], index: 8, kind: input, shape index: {}]   ;;  %s1383_s9 = inlined_call_operand.hbm [shape: bf16[128,128], index: 9, kind: input, shape index: {}]   ;;  %s1384_s10 = inlined_call_operand.vmem [shape: f32[1,128], index: 10, kind: input, shape index: {}]   ;;  %s1385_s11 = inlined_call_operand.hbm [shape: f32[8,128], index: 11, kind: output, shape index: {}]  }
   0x1   :  { %17 = vsyncpa [#allocation6], 0 }
   0x2   :  { %18 = vsyncpa [#allocation9], 0 }
   0x3   :  { %19 = vsyncpa [#allocation12], 0 }
   0x4   :  { %20 = vsyncpa [#allocation4], 0  ;;  %s1134_s17 = smov [#allocation5]   ;;  %s970_s21 = scalar_lea.hbm %s1375_s1, 1024 }
   0x5   :  { %s36_s18 = sshll.u32 %s1134_s17, 4  ;;  %p971_p0 = scmp.ne.s32.totalorder %s1375_s1, %s970_s21  ;;  %s37_s18 = int_to_ptr.vmem [resolvable:$true] %s36_s18 }
   0x6   :  { %p974_p1 = scmp.lt.u32.totalorder %s970_s21, %s1375_s1 }
   0x8   :  { %p976_p2 = pnand %p974_p1, %p971_p0 }
   0xa   :  { %979 = shalt.err (!%p976_p2)
}
   0xb   :  { %s980_s26 = scalar_lea.vmem %s37_s18, 1024  ;;  %p985_p4 = scmp.lt.s32.totalorder %s37_s18, %s37_s18 }
   0xc   :  { %p981_p3 = scmp.ne.s32.totalorder %s37_s18, %s980_s26  ;;  %p986_p5 = scmp.lt.s32.totalorder %s980_s26, %s980_s26 }
   0xe   :  { %p987_p6 = por %p986_p5, %p985_p4 }
  0x10   :  { %p988_p7 = pnand %p987_p6, %p981_p3 }
  0x12   :  { %991 = shalt.err (!%p988_p7)
}
  0x13   :  { %s1135_s27 = smov 64   ;;  %s1136_s28 = smov 4  }
  0x14   :  { %42 = dma.hbm_to_vmem [thread:$0]  %s1375_s1, 1024, %s37_s18, [#allocation6], %s1135_s27, %s1135_s27, %s1136_s28  }
  0x15   :  { %s1137_s12 = smov [#allocation8]   ;;  %s1138_s14 = smov [#allocation2]  }
  0x16   :  { %s64_s13 = sshll.u32 %s1137_s12, 4  ;;  %s27_s15 = sshll.u32 %s1138_s14, 4  ;;  %s65_s13 = int_to_ptr.vmem [resolvable:$true] %s64_s13  ;;  %s28_s15 = int_to_ptr.vmem [resolvable:$true] %s27_s15 }
  0x17   :  { %s992_s19 = scalar_lea.hbm %s1379_s5, 1024 }
  0x18   :  { %p993_p8 = scmp.ne.s32.totalorder %s1379_s5, %s992_s19  ;;  %p996_p9 = scmp.lt.u32.totalorder %s992_s19, %s1379_s5 }
  0x1a   :  { %p998_p10 = pnand %p996_p9, %p993_p8 }
  0x1c   :  { %1001 = shalt.err (!%p998_p10)
}
  0x1d   :  { %s1002_s1 = scalar_lea.vmem %s65_s13, 1024  ;;  %p1007_p12 = scmp.lt.s32.totalorder %s65_s13, %s65_s13 }
  0x1e   :  { %p1003_p11 = scmp.ne.s32.totalorder %s65_s13, %s1002_s1  ;;  %p1008_p13 = scmp.lt.s32.totalorder %s1002_s1, %s1002_s1 }
  0x20   :  { %p1009_p0 = por %p1008_p13, %p1007_p12 }
  0x22   :  { %p1010_p1 = pnand %p1009_p0, %p1003_p11 }
  0x24   :  { %1013 = shalt.err (!%p1010_p1)
}
  0x25   :  { %70 = dma.hbm_to_vmem [thread:$0]  %s1379_s5, 1024, %s65_s13, [#allocation9], %s1135_s27, %s1135_s27, %s1136_s28  }
  0x26   :  { %s1014_s29 = scalar_lea.hbm %s1374_s0, 64 }
  0x27   :  { %p1015_p2 = scmp.ne.s32.totalorder %s1374_s0, %s1014_s29  ;;  %p1018_p3 = scmp.lt.u32.totalorder %s1014_s29, %s1374_s0 }
  0x29   :  { %p1020_p4 = pnand %p1018_p3, %p1015_p2 }
  0x2b   :  { %1023 = shalt.err (!%p1020_p4)
}
  0x2c   :  { %s1024_s17 = scalar_lea.vmem %s28_s15, 64  ;;  %p1029_p6 = scmp.lt.s32.totalorder %s28_s15, %s28_s15 }
  0x2d   :  { %p1025_p5 = scmp.ne.s32.totalorder %s28_s15, %s1024_s17  ;;  %p1030_p7 = scmp.lt.s32.totalorder %s1024_s17, %s1024_s17 }
  0x2f   :  { %p1031_p8 = por %p1030_p7, %p1029_p6 }
  0x31   :  { %p1032_p9 = pnand %p1031_p8, %p1025_p5 }
  0x33   :  { %1035 = shalt.err (!%p1032_p9)
}
  0x34   :  { %30 = dma.hbm_to_vmem [thread:$0]  %s1374_s0, 64, %s28_s15, [#allocation3]  }
  0x35   :  { %s1139_s19 = smov [#allocation7]   ;;  %s1140_s21 = smov [#allocation10]  }
  0x36   :  { %s50_s20 = sshll.u32 %s1139_s19, 4  ;;  %s78_s22 = sshll.u32 %s1140_s21, 4  ;;  %s51_s20 = int_to_ptr.vmem [resolvable:$true] %s50_s20  ;;  %s79_s22 = int_to_ptr.vmem [resolvable:$true] %s78_s22 }
  0x37   :  { %s1036_s18 = scalar_lea.hbm %s1377_s3, 1024 }
  0x38   :  { %p1037_p10 = scmp.ne.s32.totalorder %s1377_s3, %s1036_s18  ;;  %p1040_p11 = scmp.lt.u32.totalorder %s1036_s18, %s1377_s3 }
  0x3a   :  { %p1042_p12 = pnand %p1040_p11, %p1037_p10 }
  0x3c   :  { %1045 = shalt.err (!%p1042_p12)
}
  0x3d   :  { %s1046_s0 = scalar_lea.vmem %s51_s20, 1024  ;;  %p1051_p0 = scmp.lt.s32.totalorder %s51_s20, %s51_s20 }
  0x3e   :  { %p1047_p13 = scmp.ne.s32.totalorder %s51_s20, %s1046_s0  ;;  %p1052_p1 = scmp.lt.s32.totalorder %s1046_s0, %s1046_s0 }
  0x40   :  { %p1053_p2 = por %p1052_p1, %p1051_p0 }
  0x42   :  { %p1054_p3 = pnand %p1053_p2, %p1047_p13 }
  0x44   :  { %1057 = shalt.err (!%p1054_p3)
}
  0x45   :  { %56 = dma.hbm_to_vmem [thread:$0]  %s1377_s3, 1024, %s51_s20, [#allocation6], %s1135_s27, %s1135_s27, %s1136_s28  }
  0x46   :  { %s1058_s16 = scalar_lea.hbm %s1381_s7, 1024 }
  0x47   :  { %p1059_p4 = scmp.ne.s32.totalorder %s1381_s7, %s1058_s16  ;;  %p1062_p5 = scmp.lt.u32.totalorder %s1058_s16, %s1381_s7 }
  0x49   :  { %p1064_p6 = pnand %p1062_p5, %p1059_p4 }
  0x4b   :  { %1067 = shalt.err (!%p1064_p6)
}
  0x4c   :  { %s1068_s21 = scalar_lea.vmem %s79_s22, 1024  ;;  %p1073_p8 = scmp.lt.s32.totalorder %s79_s22, %s79_s22 }
  0x4d   :  { %p1069_p7 = scmp.ne.s32.totalorder %s79_s22, %s1068_s21  ;;  %p1074_p9 = scmp.lt.s32.totalorder %s1068_s21, %s1068_s21 }
  0x4f   :  { %p1075_p10 = por %p1074_p9, %p1073_p8 }
  0x51   :  { %p1076_p11 = pnand %p1075_p10, %p1069_p7 }
  0x53   :  { %1079 = shalt.err (!%p1076_p11)
}
  0x54   :  { %84 = dma.hbm_to_vmem [thread:$0]  %s1381_s7, 1024, %s79_s22, [#allocation9], %s1135_s27, %s1135_s27, %s1136_s28  }
  0x55   :  { %s1141_s23 = smov [#allocation11]   ;;  %s1080_s25 = scalar_lea.hbm %s1383_s9, 1024 }
  0x56   :  { %s92_s1 = sshll.u32 %s1141_s23, 4  ;;  %p1081_p12 = scmp.ne.s32.totalorder %s1383_s9, %s1080_s25  ;;  %s93_s1 = int_to_ptr.vmem [resolvable:$true] %s92_s1 }
  0x57   :  { %p1084_p13 = scmp.lt.u32.totalorder %s1080_s25, %s1383_s9 }
  0x59   :  { %p1086_p0 = pnand %p1084_p13, %p1081_p12 }
  0x5b   :  { %1089 = shalt.err (!%p1086_p0)
}
  0x5c   :  { %s1090_s30 = scalar_lea.vmem %s93_s1, 1024  ;;  %p1095_p2 = scmp.lt.s32.totalorder %s93_s1, %s93_s1 }
  0x5d   :  { %p1091_p1 = scmp.ne.s32.totalorder %s93_s1, %s1090_s30  ;;  %p1096_p3 = scmp.lt.s32.totalorder %s1090_s30, %s1090_s30 }
  0x5f   :  { %p1097_p4 = por %p1096_p3, %p1095_p2 }
  0x61   :  { %p1098_p5 = pnand %p1097_p4, %p1091_p1 }
  0x63   :  { %1101 = shalt.err (!%p1098_p5)
}
  0x64   :  { %98 = dma.hbm_to_vmem [thread:$0]  %s1383_s9, 1024, %s93_s1, [#allocation12], %s1135_s27, %s1135_s27, %s1136_s28  }
  0x65   :  { %1124 = dma.done.wait [#allocation3], 64  }
  0x66   :  { %1125 = vsyncadd [#allocation3], 4294967232 }
  0x67   :  { %1126 = dma.done.wait [#allocation6], 2048  }
  0x68   :  { %1127 = vsyncadd [#allocation6], 4294965248 }
  0x69   :  { %1128 = dma.done.wait [#allocation9], 2048  }
  0x6a   :  { %1129 = vsyncadd [#allocation9], 4294965248 }
  0x6b   :  { %1130 = dma.done.wait [#allocation12], 1024  }
  0x6c   :  { %1131 = vsyncadd [#allocation12], 4294966272  ;;  %v1142_v0 = vmov 0.0   ;;  %vm1143_vm0 = vmmov 0   ;;  %v920_v1 = vld [vmem:[#allocation5] sm:$0xff]   ;;  %v921_v2 = vld [vmem:[#allocation5 + $0x8] sm:$0xff]  }
  0x6d   :  { %809 = vmatprep.subr.bf16.mxu0 %v1142_v0  ;;  %825 = vmatprep.mubr.msk.bf16.mxu0 %vm1143_vm0, %v1142_v0  ;;  %v922_v3 = vld [vmem:[#allocation5 + $0x10] sm:$0xff]   ;;  %v928_v4 = vld [vmem:[#allocation7] sm:$0xff]   ;;  %v923_v5 = vld [vmem:[#allocation5 + $0x18] sm:$0xff]  }
  0x6e   :  { %829 = vmatprep.subr.bf16.mxu1 %v1142_v0  ;;  %845 = vmatprep.mubr.msk.bf16.mxu1 %vm1143_vm0, %v1142_v0  ;;  %v929_v6 = vld [vmem:[#allocation7 + $0x8] sm:$0xff]   ;;  %v924_v7 = vld [vmem:[#allocation5 + $0x20] sm:$0xff]   ;;  %v930_v8 = vld [vmem:[#allocation7 + $0x10] sm:$0xff]  }
  0x6f   :  { %810 = vmatpush3.bf16.msra.mxu0 %v920_v1  ;;  %830 = vmatpush3.bf16.msra.mxu1 %v928_v4  ;;  %v925_v9 = vld [vmem:[#allocation5 + $0x28] sm:$0xff]   ;;  %v926_v10 = vld [vmem:[#allocation5 + $0x30] sm:$0xff]   ;;  %v927_v11 = vld [vmem:[#allocation5 + $0x38] sm:$0xff]  }
  0x70   :  { %811 = vmatprep.subr.bf16.mxu0 %v1142_v0  ;;  %831 = vmatprep.subr.bf16.mxu1 %v1142_v0  ;;  %v120_v12 = vld [vmem:[#allocation2] sm:$0xf]  ;;  %v932_v14 = vld [vmem:[#allocation7 + $0x20] sm:$0xff]   ;;  %v933_v15 = vld [vmem:[#allocation7 + $0x28] sm:$0xff]  }
  0x71   :  { %v931_v13 = vld [vmem:[#allocation7 + $0x18] sm:$0xff]   ;;  %v934_v16 = vld [vmem:[#allocation7 + $0x30] sm:$0xff]   ;;  %v936_v18 = vld [vmem:[#allocation8] sm:$0xff]  }
  0x72   :  { %v935_v17 = vld [vmem:[#allocation7 + $0x38] sm:$0xff]   ;;  %v937_v19 = vld [vmem:[#allocation8 + $0x8] sm:$0xff]   ;;  %v938_v20 = vld [vmem:[#allocation8 + $0x10] sm:$0xff]  }
  0x73   :  { %812 = vmatpush3.bf16.msra.mxu0 %v921_v2  ;;  %832 = vmatpush3.bf16.msra.mxu1 %v929_v6  ;;  %v939_v21 = vld [vmem:[#allocation8 + $0x18] sm:$0xff]   ;;  %v940_v22 = vld [vmem:[#allocation8 + $0x20] sm:$0xff]   ;;  %v941_v23 = vld [vmem:[#allocation8 + $0x28] sm:$0xff]  }
  0x74   :  { %813 = vmatprep.subr.bf16.mxu0 %v1142_v0  ;;  %833 = vmatprep.subr.bf16.mxu1 %v1142_v0  ;;  %v942_v24 = vld [vmem:[#allocation8 + $0x30] sm:$0xff]   ;;  %v717_v25 = vld [vmem:[%s1376_s2] ss:$0 sm:$0xff]  ;;  %v944_v45 = vld [vmem:[#allocation10] sm:$0xff]  }
  0x75   :  { %v943_v37 = vld [vmem:[#allocation8 + $0x38] sm:$0xff]   ;;  %v945_v46 = vld [vmem:[#allocation10 + $0x8] sm:$0xff]   ;;  %v946_v47 = vld [vmem:[#allocation10 + $0x10] sm:$0xff]  }
  0x76   :  { %v726_v38 = vld [vmem:[%s1378_s4] ss:$0 sm:$0xff]  ;;  %v948_v49 = vld [vmem:[#allocation10 + $0x20] sm:$0xff]   ;;  %v949_v50 = vld [vmem:[#allocation10 + $0x28] sm:$0xff]  }
  0x77   :  { %814 = vmatpush3.bf16.msra.mxu0 %v922_v3  ;;  %834 = vmatpush3.bf16.msra.mxu1 %v930_v8  ;;  %v947_v48 = vld [vmem:[#allocation10 + $0x18] sm:$0xff]   ;;  %v950_v51 = vld [vmem:[#allocation10 + $0x30] sm:$0xff]   ;;  %v952_v1 = vld [vmem:[#allocation11] sm:$0xff]  }
  0x78   :  { %815 = vmatprep.subr.bf16.mxu0 %v1142_v0  ;;  %835 = vmatprep.subr.bf16.mxu1 %v1142_v0  ;;  %v951_v52 = vld [vmem:[#allocation10 + $0x38] sm:$0xff]   ;;  %v953_v2 = vld [vmem:[#allocation11 + $0x8] sm:$0xff]   ;;  %v954_v3 = vld [vmem:[#allocation11 + $0x10] sm:$0xff]  }
  0x79   :  { %v735_v53 = vld [vmem:[%s1380_s6] ss:$0 sm:$0xff]  ;;  %v957_v6 = vld [vmem:[#allocation11 + $0x28] sm:$0xff]  }
  0x7a   :  { %v955_v4 = vld [vmem:[#allocation11 + $0x18] sm:$0xff]  }
  0x7b   :  { %816 = vmatpush3.bf16.msra.mxu0 %v923_v5  ;;  %836 = vmatpush3.bf16.msra.mxu1 %v931_v13  ;;  %v956_v5 = vld [vmem:[#allocation11 + $0x20] sm:$0xff]   ;;  %v959_v8 = vld [vmem:[#allocation11 + $0x38] sm:$0xff]  }
  0x7c   :  { %817 = vmatprep.subr.bf16.mxu0 %v1142_v0  ;;  %837 = vmatprep.subr.bf16.mxu1 %v1142_v0 }
  0x7f   :  { %818 = vmatpush3.bf16.msra.mxu0 %v924_v7  ;;  %838 = vmatpush3.bf16.msra.mxu1 %v932_v14  ;;  %v958_v7 = vld [vmem:[#allocation11 + $0x30] sm:$0xff]  }
  0x80   :  { %819 = vmatprep.subr.bf16.mxu0 %v1142_v0  ;;  %839 = vmatprep.subr.bf16.mxu1 %v1142_v0 }
  0x83   :  { %820 = vmatpush3.bf16.msra.mxu0 %v925_v9  ;;  %840 = vmatpush3.bf16.msra.mxu1 %v933_v15  ;;  %v745_v9 = vld [vmem:[%s1382_s8] ss:$0 sm:$0xff]  ;;  %s1144_s8 = smov [#allocation13]  }
  0x84   :  { %821 = vmatprep.subr.bf16.mxu0 %v1142_v0  ;;  %841 = vmatprep.subr.bf16.mxu1 %v1142_v0  ;;  %s705_s5 = sshll.u32 %s1144_s8, 4  ;;  %s706_s5 = int_to_ptr.vmem [resolvable:$true] %s705_s5 }
  0x85   :  { %s1102_s13 = scalar_lea.vmem %s706_s5, 128  ;;  %p1107_p7 = scmp.lt.s32.totalorder %s706_s5, %s706_s5 }
  0x86   :  { %p1103_p6 = scmp.ne.s32.totalorder %s706_s5, %s1102_s13  ;;  %p1108_p8 = scmp.lt.s32.totalorder %s1102_s13, %s1102_s13 }
  0x87   :  { %822 = vmatpush3.bf16.msra.mxu0 %v926_v10  ;;  %842 = vmatpush3.bf16.msra.mxu1 %v934_v16 }
  0x88   :  { %823 = vmatprep.subr.bf16.mxu0 %v1142_v0  ;;  %843 = vmatprep.subr.bf16.mxu1 %v1142_v0  ;;  %p1109_p9 = por %p1108_p8, %p1107_p7 }
  0x8a   :  { %p1110_p10 = pnand %p1109_p9, %p1103_p6 }
  0x8b   :  { %824 = vmatpush3.bf16.msra.mxu0 %v927_v11  ;;  %844 = vmatpush3.bf16.msra.mxu1 %v935_v17 }
  0x8c   :  { %849 = vmatprep.subr.bf16.mxu0 %v1142_v0  ;;  %869 = vmatprep.subr.bf16.mxu1 %v1142_v0 }
  0x8e   :  { %826 = vmatmul.mubr.bf16.vlgmr.msra.gmra.mrb[0].mxu0 %v120_v12 }
  0x8f   :  { %865 = vmatprep.mubr.msk.bf16.mxu0 %vm1143_vm0, %v1142_v0  ;;  %850 = vmatpush3.bf16.msra.mxu0 %v936_v18 }
  0x90   :  { %851 = vmatprep.subr.bf16.mxu0 %v1142_v0 }
  0x93   :  { %852 = vmatpush3.bf16.msra.mxu0 %v937_v19 }
  0x94   :  { %853 = vmatprep.subr.bf16.mxu0 %v1142_v0 }
  0x97   :  { %854 = vmatpush3.bf16.msra.mxu0 %v938_v20 }
  0x98   :  { %855 = vmatprep.subr.bf16.mxu0 %v1142_v0 }
  0x9b   :  { %856 = vmatpush3.bf16.msra.mxu0 %v939_v21 }
  0x9c   :  { %857 = vmatprep.subr.bf16.mxu0 %v1142_v0 }
  0x9f   :  { %858 = vmatpush3.bf16.msra.mxu0 %v940_v22 }
  0xa0   :  { %859 = vmatprep.subr.bf16.mxu0 %v1142_v0 }
  0xa3   :  { %860 = vmatpush3.bf16.msra.mxu0 %v941_v23 }
  0xa4   :  { %861 = vmatprep.subr.bf16.mxu0 %v1142_v0 }
  0xa7   :  { %862 = vmatpush3.bf16.msra.mxu0 %v942_v24 }
  0xa8   :  { %863 = vmatprep.subr.bf16.mxu0 %v1142_v0 }
  0xab   :  { %864 = vmatpush3.bf16.msra.mxu0 %v943_v37 }
  0xac   :  { %889 = vmatprep.subr.bf16.mxu0 %v1142_v0 }
 0x161   :  { %v226_v26 = vpop.f32.mrb[0].mxu0 }
 0x162   :  { %v227_v27 = vadd.f32 %v717_v25, %v226_v26  ;;  %v827_v28 = vpop.f32.mrb[1].mxu0 }
 0x163   :  { %v229_v29 = vpop.f32.mrb[2].mxu0 }
 0x164   :  { %v233_v30 = vmul.f32 0.70710677, %v227_v27  ;;  %v828_v31 = vpop.f32.mrb[3].mxu0  ;;  %v232_v33 = vmul.f32 0.5, %v227_v27 }
 0x166   :  { %960 = verf.f32 %v233_v30 }
 0x170   :  { %v961_v32 = vpop.eup %960 }
 0x171   :  { %v235_v34 = vadd.f32 1.0, %v961_v32 }
 0x173   :  { %v236_v35 = vmul.f32 %v235_v34, %v232_v33 }
 0x175   :  { %v237_v36 = vpack.c.bf16 %v236_v35, %v236_v35 }
 0x177   :  { %846 = vmatmul.mubr.bf16.vlgmr.msra.gmra.mrb[0].mxu1 %v237_v36 }
 0x178   :  { %885 = vmatprep.mubr.msk.bf16.mxu1 %vm1143_vm0, %v1142_v0  ;;  %870 = vmatpush3.bf16.msra.mxu1 %v944_v45 }
 0x179   :  { %871 = vmatprep.subr.bf16.mxu1 %v1142_v0 }
 0x17c   :  { %872 = vmatpush3.bf16.msra.mxu1 %v945_v46 }
 0x17d   :  { %873 = vmatprep.subr.bf16.mxu1 %v1142_v0 }
 0x180   :  { %874 = vmatpush3.bf16.msra.mxu1 %v946_v47 }
 0x181   :  { %875 = vmatprep.subr.bf16.mxu1 %v1142_v0 }
 0x184   :  { %876 = vmatpush3.bf16.msra.mxu1 %v947_v48 }
 0x185   :  { %877 = vmatprep.subr.bf16.mxu1 %v1142_v0 }
 0x188   :  { %878 = vmatpush3.bf16.msra.mxu1 %v948_v49 }
 0x189   :  { %879 = vmatprep.subr.bf16.mxu1 %v1142_v0 }
 0x18c   :  { %880 = vmatpush3.bf16.msra.mxu1 %v949_v50 }
 0x18d   :  { %881 = vmatprep.subr.bf16.mxu1 %v1142_v0 }
 0x190   :  { %882 = vmatpush3.bf16.msra.mxu1 %v950_v51 }
 0x191   :  { %883 = vmatprep.subr.bf16.mxu1 %v1142_v0 }
 0x194   :  { %884 = vmatpush3.bf16.msra.mxu1 %v951_v52 }
 0x24a   :  { %v343_v39 = vpop.f32.mrb[0].mxu1 }
 0x24b   :  { %v1332_v40 = vadd.f32 %v726_v38, %v343_v39  ;;  %v847_v41 = vpop.f32.mrb[1].mxu1 }
 0x24c   :  { %v346_v42 = vpop.f32.mrb[2].mxu1 }
 0x24d   :  { %v349_v43 = vpack.c.bf16 %v1332_v40, %v1332_v40  ;;  %v848_v44 = vpop.f32.mrb[3].mxu1 }
 0x24f   :  { %866 = vmatmul.mubr.bf16.vlgmr.msra.gmra.mrb[4].mxu0 %v349_v43 }
 0x250   :  { %905 = vmatprep.mubr.msk.bf16.mxu0 %vm1143_vm0, %v1142_v0  ;;  %890 = vmatpush3.bf16.msra.mxu0 %v952_v1 }
 0x251   :  { %891 = vmatprep.subr.bf16.mxu0 %v1142_v0 }
 0x254   :  { %892 = vmatpush3.bf16.msra.mxu0 %v953_v2 }
 0x255   :  { %893 = vmatprep.subr.bf16.mxu0 %v1142_v0 }
 0x258   :  { %894 = vmatpush3.bf16.msra.mxu0 %v954_v3 }
 0x259   :  { %895 = vmatprep.subr.bf16.mxu0 %v1142_v0 }
 0x25c   :  { %896 = vmatpush3.bf16.msra.mxu0 %v955_v4 }
 0x25d   :  { %897 = vmatprep.subr.bf16.mxu0 %v1142_v0 }
 0x260   :  { %898 = vmatpush3.bf16.msra.mxu0 %v956_v5 }
 0x261   :  { %899 = vmatprep.subr.bf16.mxu0 %v1142_v0 }
 0x264   :  { %900 = vmatpush3.bf16.msra.mxu0 %v957_v6 }
 0x265   :  { %901 = vmatprep.subr.bf16.mxu0 %v1142_v0 }
 0x268   :  { %902 = vmatpush3.bf16.msra.mxu0 %v958_v7 }
 0x269   :  { %903 = vmatprep.subr.bf16.mxu0 %v1142_v0  ;;  %v755_v0 = vld [vmem:[%s1384_s10] ss:$0 sm:$0xff] }
 0x26c   :  { %904 = vmatpush3.bf16.msra.mxu0 %v959_v8 }
 0x322   :  { %v455_v54 = vpop.f32.mrb[4].mxu0 }
 0x323   :  { %v456_v55 = vadd.f32 %v735_v53, %v455_v54  ;;  %v867_v56 = vpop.f32.mrb[5].mxu0 }
 0x324   :  { %v458_v57 = vpop.f32.mrb[6].mxu0 }
 0x325   :  { %v744_v58 = vmul.f32 -1.442695, %v456_v55  ;;  %v868_v59 = vpop.f32.mrb[7].mxu0 }
 0x327   :  { %962 = vpow2.f32 %v744_v58 }
 0x331   :  { %v963_v60 = vpop.eup %962 }
 0x332   :  { %v464_v61 = vadd.f32 1.0, %v963_v60 }
 0x334   :  { %964 = vrcp.f32 %v464_v61 }
 0x33e   :  { %v965_v62 = vpop.eup %964 }
 0x33f   :  { %v467_v63 = vpack.c.bf16 %v965_v62, %v965_v62 }
 0x341   :  { %886 = vmatmul.mubr.bf16.vlgmr.msra.gmra.mrb[4].mxu1 %v467_v63 }
 0x414   :  { %v573_v10 = vpop.f32.mrb[4].mxu1 }
 0x415   :  { %v574_v11 = vadd.f32 %v745_v9, %v573_v10  ;;  %v887_v12 = vpop.f32.mrb[5].mxu1 }
 0x416   :  { %v576_v13 = vpop.f32.mrb[6].mxu1 }
 0x417   :  { %v754_v14 = vmul.f32 -1.442695, %v574_v11  ;;  %v888_v15 = vpop.f32.mrb[7].mxu1 }
 0x419   :  { %966 = vpow2.f32 %v754_v14 }
 0x423   :  { %v967_v16 = vpop.eup %966 }
 0x424   :  { %v582_v17 = vadd.f32 1.0, %v967_v16 }
 0x426   :  { %968 = vrcp.f32 %v582_v17 }
 0x430   :  { %v969_v18 = vpop.eup %968 }
 0x431   :  { %v585_v19 = vmul.f32 %v969_v18, %v1332_v40 }
 0x433   :  { %v586_v20 = vpack.c.bf16 %v585_v19, %v585_v19 }
 0x435   :  { %906 = vmatmul.mubr.bf16.vlgmr.msra.gmra.mrb[8].mxu0 %v586_v20 }
 0x508   :  { %v692_v21 = vpop.f32.mrb[8].mxu0 }
 0x509   :  { %v693_v22 = vadd.f32 %v755_v0, %v692_v21  ;;  %v907_v23 = vpop.f32.mrb[9].mxu0 }
 0x50a   :  { %v695_v24 = vpop.f32.mrb[10].mxu0 }
 0x50b   :  { %698 = vst [vmem:[#allocation13] sm:$0xff] %v693_v22  ;;  %v908_v25 = vpop.f32.mrb[11].mxu0 }
 0x50c   :  { %1113 = shalt.err (!%p1110_p10)
}
 0x50d   :  { %s1114_s10 = scalar_lea.hbm %s1385_s11, 128 }
 0x50e   :  { %p1115_p11 = scmp.ne.s32.totalorder %s1385_s11, %s1114_s10  ;;  %p1118_p12 = scmp.lt.u32.totalorder %s1114_s10, %s1385_s11 }
 0x510   :  { %p1120_p13 = pnand %p1118_p12, %p1115_p11 }
 0x512   :  { %1123 = shalt.err (!%p1120_p13)
}
 0x513   :  { %708 = dma.vmem_to_hbm [thread:$0]  %s706_s5, 128, %s1385_s11, [#allocation4]  }
 0x514   :  { %1132 = dma.done.wait [#allocation4], 128  }
 0x515   :  { %1133 = vsyncadd [#allocation4], 4294967168 }
 0x516   :  { %712 = vsyncpa [#allocation3], 1 }
 0x517   :  { %713 = vsyncpa [#allocation6], 1 }
 0x518   :  { %714 = vsyncpa [#allocation9], 1 }
 0x519   :  { %715 = vsyncpa [#allocation12], 1 }
 0x51a   :  { %716 = vsyncpa [#allocation4], 1 }

</bundles_post_ra>
